<compile_context>
chip_gen: v6e
topology: v6e:2x2x1
jax: 0.10.0
libtpu: 0.0.40
codegen_flags: <defaults>
</compile_context>

<pallas_src>
import jax
import jax.numpy as jnp
from jax.experimental import pallas as pl
from jax.experimental.pallas import tpu as pltpu

BN_EPS = 1e-4                    # nn.BatchNorm2d(eps=0.0001)
TILE_M = 2048                    # rows/tile; amortizes per-grid-step overhead
                                 # (v5e/v6e sweet spot; v7x could go 4096)
VMEM_LIMIT = 32 * 1024 * 1024    # plenty for <5 MiB/step footprint, leaves
                                 # headroom on v7x (64 MiB physical per TC)


def _round_up(x, m):
    return (x + m - 1) // m * m


# ------------- pass 1: conv-as-matmul + per-tile per-channel sums -------------

def _matmul_stats_kernel(p_ref, w_ref, y_ref, s_ref, ss_ref):
    """y = patches @ w on the MXU (bf16 in, f32 accum); per-tile column sums."""
    y = jnp.dot(p_ref[...], w_ref[...], preferred_element_type=jnp.float32)
    # Column reductions on the MXU (ones-matmul): every row of the result is
    # the column sum; store a single row of partials per tile.
    ones = jnp.ones((8, y.shape[0]), jnp.float32)
    s = jnp.dot(ones, y, preferred_element_type=jnp.float32)
    ss = jnp.dot(ones, y * y, preferred_element_type=jnp.float32)
    s_ref[0] = s[:1, :]
    ss_ref[0] = ss[:1, :]
    # Stats use the f32 accumulator above; only the HBM copy of y is bf16.
    y_ref[...] = y.astype(y_ref.dtype)


def _conv_matmul_stats(patches, wk, tile_m):
    Mpad, K = patches.shape
    Cout = wk.shape[1]
    n_tiles = Mpad // tile_m
    return pl.pallas_call(
        _matmul_stats_kernel,
        out_shape=(
            jax.ShapeDtypeStruct((Mpad, Cout), jnp.bfloat16),       # y (conv output)
            jax.ShapeDtypeStruct((n_tiles, 1, Cout), jnp.float32),  # per-tile sums
            jax.ShapeDtypeStruct((n_tiles, 1, Cout), jnp.float32),  # per-tile sumsq
        ),
        grid=(n_tiles,),
        in_specs=[
            pl.BlockSpec((tile_m, K), lambda i: (i, 0)),
            pl.BlockSpec((K, Cout), lambda i: (0, 0)),
        ],
        out_specs=(
            pl.BlockSpec((tile_m, Cout), lambda i: (i, 0)),
            pl.BlockSpec((1, 1, Cout), lambda i: (i, 0, 0)),
            pl.BlockSpec((1, 1, Cout), lambda i: (i, 0, 0)),
        ),
        compiler_params=pltpu.CompilerParams(
            dimension_semantics=("parallel",),   # tiles independent -> megacore on v7x
            vmem_limit_bytes=VMEM_LIMIT,
        ),
        cost_estimate=pl.CostEstimate(
            flops=2 * Mpad * K * Cout + 2 * 2 * 8 * Mpad * Cout,
            transcendentals=0,
            bytes_accessed=(Mpad * K * 2 + K * Cout * 2 + Mpad * Cout * 2
                            + 2 * n_tiles * Cout * 4),
        ),
    )(patches, wk)


# ----------------- pass 2: folded BatchNorm (scale/shift) + ReLU ----------------

def _bn_relu_kernel(y_ref, scale_ref, shift_ref, o_ref):
    y = y_ref[...].astype(jnp.float32)
    o_ref[...] = jnp.maximum(y * scale_ref[...] + shift_ref[...],
                             0.0).astype(o_ref.dtype)


def _bn_relu(y, scale, shift, tile_m, out_dtype):
    Mpad, Cout = y.shape
    n_tiles = Mpad // tile_m
    out_bytes = jnp.dtype(out_dtype).itemsize
    return pl.pallas_call(
        _bn_relu_kernel,
        out_shape=jax.ShapeDtypeStruct((Mpad, Cout), out_dtype),
        grid=(n_tiles,),
        in_specs=[
            pl.BlockSpec((tile_m, Cout), lambda i: (i, 0)),
            pl.BlockSpec((1, Cout), lambda i: (0, 0)),
            pl.BlockSpec((1, Cout), lambda i: (0, 0)),
        ],
        out_specs=pl.BlockSpec((tile_m, Cout), lambda i: (i, 0)),
        compiler_params=pltpu.CompilerParams(
            dimension_semantics=("parallel",),
            vmem_limit_bytes=VMEM_LIMIT,
        ),
        cost_estimate=pl.CostEstimate(
            flops=3 * Mpad * Cout,
            transcendentals=0,
            bytes_accessed=Mpad * Cout * 2 + Mpad * Cout * out_bytes + 2 * Cout * 4,
        ),
    )(y, scale, shift)


# --------------------------------- JAX glue -------------------------------------

def _im2col_3x3_s2_p1(x_nhwc):
    """3x3 conv, stride 2, pad 1 -> flattened patch rows, ordered (ky, kx, cin)."""
    N, H, W, C = x_nhwc.shape
    Ho, Wo = (H + 1) // 2, (W + 1) // 2
    xp = jnp.pad(x_nhwc, ((0, 0), (1, 1), (1, 1), (0, 0)))
    taps = []
    for ky in range(3):
        for kx in range(3):
            taps.append(xp[:, ky:ky + 2 * Ho:2, kx:kx + 2 * Wo:2, :])  # (N,Ho,Wo,C)
    p = jnp.stack(taps, axis=3)                       # (N, Ho, Wo, 9, C)
    return p.reshape(N * Ho * Wo, 9 * C), (N, Ho, Wo)


def _conv_bn_relu_stage(x_nhwc, w, gamma, beta, *, out_dtype=jnp.float32,
                        tile_m=TILE_M):
    """One Conv2d(3,2,1,bias=False) + BatchNorm2d(train) + ReLU stage."""
    Cin = x_nhwc.shape[-1]
    Cout = w.shape[0]

    # im2col rows in bf16 (halves the HBM intermediate, feeds the MXU at bf16 rate).
    patches, (N, Ho, Wo) = _im2col_3x3_s2_p1(x_nhwc.astype(jnp.bfloat16))
    M, K = patches.shape

    tm = min(tile_m, _round_up(M, 8))
    Mpad = _round_up(M, tm)
    patches = jnp.pad(patches, ((0, Mpad - M), (0, 0)))   # zero rows: no effect on sums

    # PyTorch conv weight (Cout, Cin, 3, 3) -> (ky, kx, Cin, Cout) -> (9*Cin, Cout).
    wk = jnp.transpose(w, (2, 3, 1, 0)).reshape(9 * Cin, Cout).astype(jnp.bfloat16)

    # Pass 1: conv matmul + per-tile channel statistics.
    y, psum, psumsq = _conv_matmul_stats(patches, wk, tm)

    # Reduce tiny per-tile partials, fold BN into per-channel scale/shift.
    # TODO(synk): E[y^2]-E[y]^2 in f32 can lose precision vs PyTorch's
    #             sum-of-squared-deviations path for ill-conditioned activations.
    s = jnp.sum(psum[:, 0, :], axis=0)                    # (Cout,)
    ss = jnp.sum(psumsq[:, 0, :], axis=0)                 # (Cout,)
    mean = s / M
    var = jnp.maximum(ss / M - mean * mean, 0.0)          # biased (train-mode) variance
    scale = gamma.astype(jnp.float32) * jax.lax.rsqrt(var + BN_EPS)
    shift = beta.astype(jnp.float32) - mean * scale

    # Pass 2: normalize + ReLU.
    out = _bn_relu(y, scale.reshape(1, Cout), shift.reshape(1, Cout), tm, out_dtype)

    return out[:M].reshape(N, Ho, Wo, Cout)


def patch_embed_forward(x_nchw, params):
    """params: list of (conv_weight (Cout,Cin,3,3), bn_gamma (Cout,), bn_beta (Cout,))."""
    x = jnp.transpose(x_nchw, (0, 2, 3, 1))  # NCHW -> NHWC
    # self.proj = nn.Identity()  (no-op)
    n_stages = len(params)
    for idx, (w, gamma, beta) in enumerate(params):
        # Intermediate stages go straight to bf16 (next im2col casts anyway and
        # ReLU commutes with the cast); the final stage stays f32.
        dt = jnp.float32 if idx == n_stages - 1 else jnp.bfloat16
        x = _conv_bn_relu_stage(x, w, gamma, beta, out_dtype=dt)
    return jnp.transpose(x, (0, 3, 1, 2))    # NHWC -> NCHW


if __name__ == "__main__":
    # PatchEmbed(in_chans=4, in_dim=32, dim=64) at small shapes.
    N, Cin, H, W = 2, 4, 16, 16
    in_dim, dim = 32, 64

    key = jax.random.PRNGKey(0)
    kx, kw1, kw2 = jax.random.split(key, 3)

    x = jax.random.normal(kx, (N, Cin, H, W), jnp.float32)

    # Deterministic parameter init (conv bias=False; BN gamma=1, beta=0 as in nn init).
    w1 = jax.random.normal(kw1, (in_dim, Cin, 3, 3), jnp.float32) * 0.1
    w2 = jax.random.normal(kw2, (dim, in_dim, 3, 3), jnp.float32) * 0.1
    params = [
        (w1, jnp.ones((in_dim,), jnp.float32), jnp.zeros((in_dim,), jnp.float32)),
        (w2, jnp.ones((dim,), jnp.float32), jnp.zeros((dim,), jnp.float32)),
    ]

    out = jax.jit(patch_embed_forward)(x, params)
    jax.block_until_ready(out)
    assert out.shape == (N, dim, H // 4, W // 4), out.shape
    assert out.dtype == jnp.float32
    print("KERNEL_OK")
</pallas_src>

<mosaic_0001>
module attributes {stable_mosaic.version = 11 : i64} {
  func.func @_bn_relu_kernel(%arg0: i32, %arg1: memref<128x32xbf16, #tpu.memory_space<vmem>>, %arg2: memref<1x32xf32, #tpu.memory_space<vmem>>, %arg3: memref<1x32xf32, #tpu.memory_space<vmem>>, %arg4: memref<128x32xbf16, #tpu.memory_space<vmem>>) attributes {dimension_semantics = [#tpu.dimension_semantics<parallel>], iteration_bounds = array<i64: 1>, scalar_prefetch = 0 : i64, scratch_operands = 0 : i64, tpu.core_type = #tpu.core_type<tc>, window_params = [{transform_indices = @transform_0, window_bounds = array<i64: 128, 32>}, {pipeline_mode = #tpu.pipeline_mode<synchronous>, transform_indices = @transform_1, window_bounds = array<i64: 1, 32>}, {pipeline_mode = #tpu.pipeline_mode<synchronous>, transform_indices = @transform_2, window_bounds = array<i64: 1, 32>}, {transform_indices = @transform_3, window_bounds = array<i64: 128, 32>}]} {
    %c0 = arith.constant 0 : index
    %c0_0 = arith.constant 0 : index
    %0 = vector.load %arg1[%c0, %c0_0] : memref<128x32xbf16, #tpu.memory_space<vmem>>, vector<128x32xbf16>
    %1 = arith.extf %0 : vector<128x32xbf16> to vector<128x32xf32>
    %c0_1 = arith.constant 0 : index
    %c0_2 = arith.constant 0 : index
    %2 = vector.load %arg2[%c0_1, %c0_2] : memref<1x32xf32, #tpu.memory_space<vmem>>, vector<1x32xf32>
    %3 = vector.broadcast %2 : vector<1x32xf32> to vector<128x32xf32>
    %4 = arith.mulf %1, %3 : vector<128x32xf32>
    %c0_3 = arith.constant 0 : index
    %c0_4 = arith.constant 0 : index
    %5 = vector.load %arg3[%c0_3, %c0_4] : memref<1x32xf32, #tpu.memory_space<vmem>>, vector<1x32xf32>
    %6 = vector.broadcast %5 : vector<1x32xf32> to vector<128x32xf32>
    %7 = arith.addf %4, %6 : vector<128x32xf32>
    %cst = arith.constant 0.000000e+00 : f32
    %8 = vector.broadcast %cst : f32 to vector<128x32xf32>
    %9 = arith.maximumf %7, %8 : vector<128x32xf32>
    %10 = arith.truncf %9 : vector<128x32xf32> to vector<128x32xbf16>
    %c0_5 = arith.constant 0 : index
    %c0_6 = arith.constant 0 : index
    %11 = vector.load %arg4[%c0_5, %c0_6] : memref<128x32xbf16, #tpu.memory_space<vmem>>, vector<128x32xbf16>
    tpu.vector_store %arg4[%c0_5, %c0_6], %10 {strides = array<i32>} : memref<128x32xbf16, #tpu.memory_space<vmem>>, vector<128x32xbf16>,
    return
  }
  func.func @transform_0(%arg0: i32) -> (i32, i32) {
    %c0_i32 = arith.constant 0 : i32
    %c0_i32_0 = arith.constant 0 : i32
    return %arg0, %c0_i32 : i32, i32
  }
  func.func @transform_1(%arg0: i32) -> (i32, i32) {
    %c0_i32 = arith.constant 0 : i32
    %c0_i32_0 = arith.constant 0 : i32
    %c0_i32_1 = arith.constant 0 : i32
    return %c0_i32, %c0_i32_0 : i32, i32
  }
  func.func @transform_2(%arg0: i32) -> (i32, i32) {
    %c0_i32 = arith.constant 0 : i32
    %c0_i32_0 = arith.constant 0 : i32
    %c0_i32_1 = arith.constant 0 : i32
    return %c0_i32, %c0_i32_0 : i32, i32
  }
  func.func @transform_3(%arg0: i32) -> (i32, i32) {
    %c0_i32 = arith.constant 0 : i32
    %c0_i32_0 = arith.constant 0 : i32
    return %arg0, %c0_i32 : i32, i32
  }
}

module attributes {stable_mosaic.version = 11 : i64} {
  func.func @_matmul_stats_kernel(%arg0: i32, %arg1: memref<128x36xbf16, #tpu.memory_space<vmem>>, %arg2: memref<36x32xbf16, #tpu.memory_space<vmem>>, %arg3: memref<128x32xbf16, #tpu.memory_space<vmem>>, %arg4: memref<1x1x32xf32, #tpu.memory_space<vmem>>, %arg5: memref<1x1x32xf32, #tpu.memory_space<vmem>>) attributes {dimension_semantics = [#tpu.dimension_semantics<parallel>], iteration_bounds = array<i64: 1>, scalar_prefetch = 0 : i64, scratch_operands = 0 : i64, tpu.core_type = #tpu.core_type<tc>, window_params = [{transform_indices = @transform_0, window_bounds = array<i64: 128, 36>}, {pipeline_mode = #tpu.pipeline_mode<synchronous>, transform_indices = @transform_1, window_bounds = array<i64: 36, 32>}, {transform_indices = @transform_2, window_bounds = array<i64: 128, 32>}, {transform_indices = @transform_3, window_bounds = array<i64: 1, 1, 32>}, {transform_indices = @transform_4, window_bounds = array<i64: 1, 1, 32>}]} {
    %c0 = arith.constant 0 : index
    %c0_0 = arith.constant 0 : index
    %0 = vector.load %arg1[%c0, %c0_0] : memref<128x36xbf16, #tpu.memory_space<vmem>>, vector<128x36xbf16>
    %c0_1 = arith.constant 0 : index
    %c0_2 = arith.constant 0 : index
    %1 = vector.load %arg2[%c0_1, %c0_2] : memref<36x32xbf16, #tpu.memory_space<vmem>>, vector<36x32xbf16>
    %cst = arith.constant dense<0.000000e+00> : vector<128x32xf32>
    %2 = tpu.matmul %0, %1, %cst {dimension_numbers = #tpu.dot_dimension_numbers<[1], [0], [0], [1], [0, 0, 1, 1], [], []>} : vector<128x36xbf16>, vector<36x32xbf16>, vector<128x32xf32> -> vector<128x32xf32>
    %cst_3 = arith.constant 1.000000e+00 : f32
    %3 = vector.broadcast %cst_3 : f32 to vector<8x128xf32>
    %cst_4 = arith.constant dense<0.000000e+00> : vector<8x32xf32>
    %4 = tpu.matmul %3, %2, %cst_4 {dimension_numbers = #tpu.dot_dimension_numbers<[1], [0], [0], [1], [0, 0, 1, 1], [], []>} : vector<8x128xf32>, vector<128x32xf32>, vector<8x32xf32> -> vector<8x32xf32>
    %5 = arith.mulf %2, %2 : vector<128x32xf32>
    %cst_5 = arith.constant dense<0.000000e+00> : vector<8x32xf32>
    %6 = tpu.matmul %3, %5, %cst_5 {dimension_numbers = #tpu.dot_dimension_numbers<[1], [0], [0], [1], [0, 0, 1, 1], [], []>} : vector<8x128xf32>, vector<128x32xf32>, vector<8x32xf32> -> vector<8x32xf32>
    %7 = vector.extract_strided_slice %4 {offsets = [0, 0], sizes = [1, 32], strides = [1, 1]} : vector<8x32xf32> to vector<1x32xf32>
    %c0_6 = arith.constant 0 : index
    %c0_7 = arith.constant 0 : index
    %c0_8 = arith.constant 0 : index
    %8 = vector.load %arg4[%c0_6, %c0_7, %c0_8] : memref<1x1x32xf32, #tpu.memory_space<vmem>>, vector<1x1x32xf32>
    %9 = vector.shape_cast %8 : vector<1x1x32xf32> to vector<1x32xf32>
    %10 = vector.shape_cast %7 : vector<1x32xf32> to vector<1x1x32xf32>
    tpu.vector_store %arg4[%c0_6, %c0_7, %c0_8], %10 {strides = array<i32>} : memref<1x1x32xf32, #tpu.memory_space<vmem>>, vector<1x1x32xf32>,
    %11 = vector.extract_strided_slice %6 {offsets = [0, 0], sizes = [1, 32], strides = [1, 1]} : vector<8x32xf32> to vector<1x32xf32>
    %c0_9 = arith.constant 0 : index
    %c0_10 = arith.constant 0 : index
    %c0_11 = arith.constant 0 : index
    %12 = vector.load %arg5[%c0_9, %c0_10, %c0_11] : memref<1x1x32xf32, #tpu.memory_space<vmem>>, vector<1x1x32xf32>
    %13 = vector.shape_cast %12 : vector<1x1x32xf32> to vector<1x32xf32>
    %14 = vector.shape_cast %11 : vector<1x32xf32> to vector<1x1x32xf32>
    tpu.vector_store %arg5[%c0_9, %c0_10, %c0_11], %14 {strides = array<i32>} : memref<1x1x32xf32, #tpu.memory_space<vmem>>, vector<1x1x32xf32>,
    %15 = arith.truncf %2 : vector<128x32xf32> to vector<128x32xbf16>
    %c0_12 = arith.constant 0 : index
    %c0_13 = arith.constant 0 : index
    %16 = vector.load %arg3[%c0_12, %c0_13] : memref<128x32xbf16, #tpu.memory_space<vmem>>, vector<128x32xbf16>
    tpu.vector_store %arg3[%c0_12, %c0_13], %15 {strides = array<i32>} : memref<128x32xbf16, #tpu.memory_space<vmem>>, vector<128x32xbf16>,
    return
  }
  func.func @transform_0(%arg0: i32) -> (i32, i32) {
    %c0_i32 = arith.constant 0 : i32
    %c0_i32_0 = arith.constant 0 : i32
    return %arg0, %c0_i32 : i32, i32
  }
  func.func @transform_1(%arg0: i32) -> (i32, i32) {
    %c0_i32 = arith.constant 0 : i32
    %c0_i32_0 = arith.constant 0 : i32
    %c0_i32_1 = arith.constant 0 : i32
    return %c0_i32, %c0_i32_0 : i32, i32
  }
  func.func @transform_2(%arg0: i32) -> (i32, i32) {
    %c0_i32 = arith.constant 0 : i32
    %c0_i32_0 = arith.constant 0 : i32
    return %arg0, %c0_i32 : i32, i32
  }
  func.func @transform_3(%arg0: i32) -> (i32, i32, i32) {
    %c0_i32 = arith.constant 0 : i32
    %c0_i32_0 = arith.constant 0 : i32
    %c0_i32_1 = arith.constant 0 : i32
    return %arg0, %c0_i32, %c0_i32_0 : i32, i32, i32
  }
  func.func @transform_4(%arg0: i32) -> (i32, i32, i32) {
    %c0_i32 = arith.constant 0 : i32
    %c0_i32_0 = arith.constant 0 : i32
    %c0_i32_1 = arith.constant 0 : i32
    return %arg0, %c0_i32, %c0_i32_0 : i32, i32, i32
  }
}

module attributes {stable_mosaic.version = 11 : i64} {
  func.func @_bn_relu_kernel(%arg0: i32, %arg1: memref<32x64xbf16, #tpu.memory_space<vmem>>, %arg2: memref<1x64xf32, #tpu.memory_space<vmem>>, %arg3: memref<1x64xf32, #tpu.memory_space<vmem>>, %arg4: memref<32x64xf32, #tpu.memory_space<vmem>>) attributes {dimension_semantics = [#tpu.dimension_semantics<parallel>], iteration_bounds = array<i64: 1>, scalar_prefetch = 0 : i64, scratch_operands = 0 : i64, tpu.core_type = #tpu.core_type<tc>, window_params = [{transform_indices = @transform_0, window_bounds = array<i64: 32, 64>}, {pipeline_mode = #tpu.pipeline_mode<synchronous>, transform_indices = @transform_1, window_bounds = array<i64: 1, 64>}, {pipeline_mode = #tpu.pipeline_mode<synchronous>, transform_indices = @transform_2, window_bounds = array<i64: 1, 64>}, {transform_indices = @transform_3, window_bounds = array<i64: 32, 64>}]} {
    %c0 = arith.constant 0 : index
    %c0_0 = arith.constant 0 : index
    %0 = vector.load %arg1[%c0, %c0_0] : memref<32x64xbf16, #tpu.memory_space<vmem>>, vector<32x64xbf16>
    %1 = arith.extf %0 : vector<32x64xbf16> to vector<32x64xf32>
    %c0_1 = arith.constant 0 : index
    %c0_2 = arith.constant 0 : index
    %2 = vector.load %arg2[%c0_1, %c0_2] : memref<1x64xf32, #tpu.memory_space<vmem>>, vector<1x64xf32>
    %3 = vector.broadcast %2 : vector<1x64xf32> to vector<32x64xf32>
    %4 = arith.mulf %1, %3 : vector<32x64xf32>
    %c0_3 = arith.constant 0 : index
    %c0_4 = arith.constant 0 : index
    %5 = vector.load %arg3[%c0_3, %c0_4] : memref<1x64xf32, #tpu.memory_space<vmem>>, vector<1x64xf32>
    %6 = vector.broadcast %5 : vector<1x64xf32> to vector<32x64xf32>
    %7 = arith.addf %4, %6 : vector<32x64xf32>
    %cst = arith.constant 0.000000e+00 : f32
    %8 = vector.broadcast %cst : f32 to vector<32x64xf32>
    %9 = arith.maximumf %7, %8 : vector<32x64xf32>
    %c0_5 = arith.constant 0 : index
    %c0_6 = arith.constant 0 : index
    %10 = vector.load %arg4[%c0_5, %c0_6] : memref<32x64xf32, #tpu.memory_space<vmem>>, vector<32x64xf32>
    tpu.vector_store %arg4[%c0_5, %c0_6], %9 {strides = array<i32>} : memref<32x64xf32, #tpu.memory_space<vmem>>, vector<32x64xf32>,
    return
  }
  func.func @transform_0(%arg0: i32) -> (i32, i32) {
    %c0_i32 = arith.constant 0 : i32
    %c0_i32_0 = arith.constant 0 : i32
    return %arg0, %c0_i32 : i32, i32
  }
  func.func @transform_1(%arg0: i32) -> (i32, i32) {
    %c0_i32 = arith.constant 0 : i32
    %c0_i32_0 = arith.constant 0 : i32
    %c0_i32_1 = arith.constant 0 : i32
    return %c0_i32, %c0_i32_0 : i32, i32
  }
  func.func @transform_2(%arg0: i32) -> (i32, i32) {
    %c0_i32 = arith.constant 0 : i32
    %c0_i32_0 = arith.constant 0 : i32
    %c0_i32_1 = arith.constant 0 : i32
    return %c0_i32, %c0_i32_0 : i32, i32
  }
  func.func @transform_3(%arg0: i32) -> (i32, i32) {
    %c0_i32 = arith.constant 0 : i32
    %c0_i32_0 = arith.constant 0 : i32
    return %arg0, %c0_i32 : i32, i32
  }
}

module attributes {stable_mosaic.version = 11 : i64} {
  func.func @_matmul_stats_kernel(%arg0: i32, %arg1: memref<32x288xbf16, #tpu.memory_space<vmem>>, %arg2: memref<288x64xbf16, #tpu.memory_space<vmem>>, %arg3: memref<32x64xbf16, #tpu.memory_space<vmem>>, %arg4: memref<1x1x64xf32, #tpu.memory_space<vmem>>, %arg5: memref<1x1x64xf32, #tpu.memory_space<vmem>>) attributes {dimension_semantics = [#tpu.dimension_semantics<parallel>], iteration_bounds = array<i64: 1>, scalar_prefetch = 0 : i64, scratch_operands = 0 : i64, tpu.core_type = #tpu.core_type<tc>, window_params = [{transform_indices = @transform_0, window_bounds = array<i64: 32, 288>}, {pipeline_mode = #tpu.pipeline_mode<synchronous>, transform_indices = @transform_1, window_bounds = array<i64: 288, 64>}, {transform_indices = @transform_2, window_bounds = array<i64: 32, 64>}, {transform_indices = @transform_3, window_bounds = array<i64: 1, 1, 64>}, {transform_indices = @transform_4, window_bounds = array<i64: 1, 1, 64>}]} {
    %c0 = arith.constant 0 : index
    %c0_0 = arith.constant 0 : index
    %0 = vector.load %arg1[%c0, %c0_0] : memref<32x288xbf16, #tpu.memory_space<vmem>>, vector<32x288xbf16>
    %c0_1 = arith.constant 0 : index
    %c0_2 = arith.constant 0 : index
    %1 = vector.load %arg2[%c0_1, %c0_2] : memref<288x64xbf16, #tpu.memory_space<vmem>>, vector<288x64xbf16>
    %cst = arith.constant dense<0.000000e+00> : vector<32x64xf32>
    %2 = tpu.matmul %0, %1, %cst {dimension_numbers = #tpu.dot_dimension_numbers<[1], [0], [0], [1], [0, 0, 1, 1], [], []>} : vector<32x288xbf16>, vector<288x64xbf16>, vector<32x64xf32> -> vector<32x64xf32>
    %cst_3 = arith.constant 1.000000e+00 : f32
    %3 = vector.broadcast %cst_3 : f32 to vector<8x32xf32>
    %cst_4 = arith.constant dense<0.000000e+00> : vector<8x64xf32>
    %4 = tpu.matmul %3, %2, %cst_4 {dimension_numbers = #tpu.dot_dimension_numbers<[1], [0], [0], [1], [0, 0, 1, 1], [], []>} : vector<8x32xf32>, vector<32x64xf32>, vector<8x64xf32> -> vector<8x64xf32>
    %5 = arith.mulf %2, %2 : vector<32x64xf32>
    %cst_5 = arith.constant dense<0.000000e+00> : vector<8x64xf32>
    %6 = tpu.matmul %3, %5, %cst_5 {dimension_numbers = #tpu.dot_dimension_numbers<[1], [0], [0], [1], [0, 0, 1, 1], [], []>} : vector<8x32xf32>, vector<32x64xf32>, vector<8x64xf32> -> vector<8x64xf32>
    %7 = vector.extract_strided_slice %4 {offsets = [0, 0], sizes = [1, 64], strides = [1, 1]} : vector<8x64xf32> to vector<1x64xf32>
    %c0_6 = arith.constant 0 : index
    %c0_7 = arith.constant 0 : index
    %c0_8 = arith.constant 0 : index
    %8 = vector.load %arg4[%c0_6, %c0_7, %c0_8] : memref<1x1x64xf32, #tpu.memory_space<vmem>>, vector<1x1x64xf32>
    %9 = vector.shape_cast %8 : vector<1x1x64xf32> to vector<1x64xf32>
    %10 = vector.shape_cast %7 : vector<1x64xf32> to vector<1x1x64xf32>
    tpu.vector_store %arg4[%c0_6, %c0_7, %c0_8], %10 {strides = array<i32>} : memref<1x1x64xf32, #tpu.memory_space<vmem>>, vector<1x1x64xf32>,
    %11 = vector.extract_strided_slice %6 {offsets = [0, 0], sizes = [1, 64], strides = [1, 1]} : vector<8x64xf32> to vector<1x64xf32>
    %c0_9 = arith.constant 0 : index
    %c0_10 = arith.constant 0 : index
    %c0_11 = arith.constant 0 : index
    %12 = vector.load %arg5[%c0_9, %c0_10, %c0_11] : memref<1x1x64xf32, #tpu.memory_space<vmem>>, vector<1x1x64xf32>
    %13 = vector.shape_cast %12 : vector<1x1x64xf32> to vector<1x64xf32>
    %14 = vector.shape_cast %11 : vector<1x64xf32> to vector<1x1x64xf32>
    tpu.vector_store %arg5[%c0_9, %c0_10, %c0_11], %14 {strides = array<i32>} : memref<1x1x64xf32, #tpu.memory_space<vmem>>, vector<1x1x64xf32>,
    %15 = arith.truncf %2 : vector<32x64xf32> to vector<32x64xbf16>
    %c0_12 = arith.constant 0 : index
    %c0_13 = arith.constant 0 : index
    %16 = vector.load %arg3[%c0_12, %c0_13] : memref<32x64xbf16, #tpu.memory_space<vmem>>, vector<32x64xbf16>
    tpu.vector_store %arg3[%c0_12, %c0_13], %15 {strides = array<i32>} : memref<32x64xbf16, #tpu.memory_space<vmem>>, vector<32x64xbf16>,
    return
  }
  func.func @transform_0(%arg0: i32) -> (i32, i32) {
    %c0_i32 = arith.constant 0 : i32
    %c0_i32_0 = arith.constant 0 : i32
    return %arg0, %c0_i32 : i32, i32
  }
  func.func @transform_1(%arg0: i32) -> (i32, i32) {
    %c0_i32 = arith.constant 0 : i32
    %c0_i32_0 = arith.constant 0 : i32
    %c0_i32_1 = arith.constant 0 : i32
    return %c0_i32, %c0_i32_0 : i32, i32
  }
  func.func @transform_2(%arg0: i32) -> (i32, i32) {
    %c0_i32 = arith.constant 0 : i32
    %c0_i32_0 = arith.constant 0 : i32
    return %arg0, %c0_i32 : i32, i32
  }
  func.func @transform_3(%arg0: i32) -> (i32, i32, i32) {
    %c0_i32 = arith.constant 0 : i32
    %c0_i32_0 = arith.constant 0 : i32
    %c0_i32_1 = arith.constant 0 : i32
    return %arg0, %c0_i32, %c0_i32_0 : i32, i32, i32
  }
  func.func @transform_4(%arg0: i32) -> (i32, i32, i32) {
    %c0_i32 = arith.constant 0 : i32
    %c0_i32_0 = arith.constant 0 : i32
    %c0_i32_1 = arith.constant 0 : i32
    return %arg0, %c0_i32, %c0_i32_0 : i32, i32, i32
  }
}

</mosaic_0001>

<bundles_post_ra>
// kernel: patch_embed_forward.5
= control target key start
LH: loop header
LB: loop body
LE: loop exit
PB: predicated region body
PF: predicated region fallthrough
CT: control target
= control target key end

     0   :  { %vm172_vm0 = vcmask 257024   ;;  %s416_s0 = inlined_call_operand.vmem [shape: bf16[128,32], index: 0, kind: input, shape index: {}]   ;;  %s417_s1 = inlined_call_operand.vmem [shape: f32[1,32], index: 1, kind: input, shape index: {}]   ;;  %s418_s2 = inlined_call_operand.vmem [shape: f32[1,32], index: 2, kind: input, shape index: {}]   ;;  %s419_s3 = inlined_call_operand.vmem [shape: bf16[128,32], index: 3, kind: output, shape index: {}]  }
   0x1   :  { %v228_v0 = vld [vmem:[%s416_s0] sm:$0xff]   ;;  %v259_v4 = vld [vmem:[%s416_s0 + $0x8] sm:$0xff]   ;;  %v260_v5 = vld [vmem:[%s416_s0 + $0x10] sm:$0xff]  }
   0x2   :  { %v292_v1 = vld [vmem:[%s417_s1] ss:$0 sm:$0xff]  ;;  %v229_v2 = vunpack.c.l.bf16 %v228_v0  ;;  %v230_v3 = vunpack.c.h.bf16 %v228_v0  ;;  %v261_v6 = vld [vmem:[%s416_s0 + $0x18] sm:$0xff]   ;;  %v233_v8 = vunpack.c.l.bf16 %v259_v4  ;;  %v234_v9 = vunpack.c.h.bf16 %v259_v4  ;;  %v263_v41 = vld [vmem:[%s416_s0 + $0x28] sm:$0xff]  }
   0x3   :  { %v306_v7 = vld [vmem:[%s418_s2] ss:$0 sm:$0xff]  ;;  %v237_v10 = vunpack.c.l.bf16 %v260_v5  ;;  %v238_v11 = vunpack.c.h.bf16 %v260_v5  ;;  %v241_v14 = vunpack.c.l.bf16 %v261_v6  ;;  %v242_v15 = vunpack.c.h.bf16 %v261_v6  ;;  %v264_v42 = vld [vmem:[%s416_s0 + $0x30] sm:$0xff]   ;;  %v265_v47 = vld [vmem:[%s416_s0 + $0x38] sm:$0xff]  }
   0x4   :  { %v53_v12 = vmul.f32 %v229_v2, %v292_v1  ;;  %v54_v13 = vmul.f32 %v230_v3, %v292_v1  ;;  %v55_v16 = vmul.f32 %v233_v8, %v292_v1  ;;  %v56_v17 = vmul.f32 %v234_v9, %v292_v1  ;;  %v262_v36 = vld [vmem:[%s416_s0 + $0x20] sm:$0xff]  }
   0x5   :  { %v57_v18 = vmul.f32 %v237_v10, %v292_v1  ;;  %v58_v19 = vmul.f32 %v238_v11, %v292_v1  ;;  %v59_v22 = vmul.f32 %v241_v14, %v292_v1  ;;  %v60_v23 = vmul.f32 %v242_v15, %v292_v1 }
   0x6   :  { %v76_v20 = vadd.f32 %v306_v7, %v53_v12  ;;  %v77_v21 = vadd.f32 %v306_v7, %v54_v13  ;;  %v78_v24 = vadd.f32 %v306_v7, %v55_v16  ;;  %v79_v25 = vadd.f32 %v306_v7, %v56_v17 }
   0x7   :  { %v80_v26 = vadd.f32 %v306_v7, %v57_v18  ;;  %v81_v27 = vadd.f32 %v306_v7, %v58_v19  ;;  %v82_v30 = vadd.f32 %v306_v7, %v59_v22  ;;  %v83_v31 = vadd.f32 %v306_v7, %v60_v23 }
   0x8   :  { %v92_v28 = vmax.f32 %v76_v20, 0.0  ;;  %v93_v29 = vmax.f32 %v77_v21, 0.0  ;;  %v94_v32 = vmax.f32 %v78_v24, 0.0  ;;  %v95_v33 = vmax.f32 %v79_v25, 0.0 }
   0x9   :  { %v96_v34 = vmax.f32 %v80_v26, 0.0  ;;  %v97_v35 = vmax.f32 %v81_v27, 0.0  ;;  %v98_v39 = vmax.f32 %v82_v30, 0.0  ;;  %v99_v40 = vmax.f32 %v83_v31, 0.0 }
   0xa   :  { %v211_v37 = vpack.c.bf16 %v92_v28, %v92_v28  ;;  %v212_v38 = vpack.c.bf16 %v93_v29, %v93_v29  ;;  %v213_v43 = vpack.c.bf16 %v94_v32, %v94_v32  ;;  %v214_v44 = vpack.c.bf16 %v95_v33, %v95_v33 }
   0xb   :  { %v215_v45 = vpack.c.bf16 %v96_v34, %v96_v34  ;;  %v216_v46 = vpack.c.bf16 %v97_v35, %v97_v35  ;;  %v217_v48 = vpack.c.bf16 %v98_v39, %v98_v39  ;;  %v218_v49 = vpack.c.bf16 %v99_v40, %v99_v40 }
   0xc   :  { %173 = vst.msk [vmem:[%s419_s3] sm:$0xf] %vm172_vm0, %v211_v37  ;;  %174 = vst.msk [vmem:[%s419_s3 + $0x4] sm:$0xf] %vm172_vm0, %v212_v38  ;;  %v245_v50 = vunpack.c.l.bf16 %v262_v36  ;;  %v246_v51 = vunpack.c.h.bf16 %v262_v36  ;;  %v249_v52 = vunpack.c.l.bf16 %v263_v41  ;;  %v250_v53 = vunpack.c.h.bf16 %v263_v41 }
   0xd   :  { %175 = vst.msk [vmem:[%s419_s3 + $0x8] sm:$0xf] %vm172_vm0, %v213_v43  ;;  %176 = vst.msk [vmem:[%s419_s3 + $0xc] sm:$0xf] %vm172_vm0, %v214_v44  ;;  %v253_v54 = vunpack.c.l.bf16 %v264_v42  ;;  %v254_v55 = vunpack.c.h.bf16 %v264_v42  ;;  %v257_v58 = vunpack.c.l.bf16 %v265_v47  ;;  %v258_v59 = vunpack.c.h.bf16 %v265_v47 }
   0xe   :  { %177 = vst.msk [vmem:[%s419_s3 + $0x10] sm:$0xf] %vm172_vm0, %v215_v45  ;;  %178 = vst.msk [vmem:[%s419_s3 + $0x14] sm:$0xf] %vm172_vm0, %v216_v46  ;;  %v61_v56 = vmul.f32 %v245_v50, %v292_v1  ;;  %v62_v57 = vmul.f32 %v246_v51, %v292_v1  ;;  %v63_v60 = vmul.f32 %v249_v52, %v292_v1 }
   0xf   :  { %179 = vst.msk [vmem:[%s419_s3 + $0x18] sm:$0xf] %vm172_vm0, %v217_v48  ;;  %180 = vst.msk [vmem:[%s419_s3 + $0x1c] sm:$0xf] %vm172_vm0, %v218_v49  ;;  %v64_v61 = vmul.f32 %v250_v53, %v292_v1  ;;  %v65_v62 = vmul.f32 %v253_v54, %v292_v1  ;;  %v66_v63 = vmul.f32 %v254_v55, %v292_v1 }
  0x10   :  { %v84_v0 = vadd.f32 %v306_v7, %v61_v56  ;;  %v85_v2 = vadd.f32 %v306_v7, %v62_v57  ;;  %v67_v3 = vmul.f32 %v257_v58, %v292_v1  ;;  %v68_v4 = vmul.f32 %v258_v59, %v292_v1 }
  0x11   :  { %v86_v5 = vadd.f32 %v306_v7, %v63_v60  ;;  %v87_v6 = vadd.f32 %v306_v7, %v64_v61  ;;  %v88_v8 = vadd.f32 %v306_v7, %v65_v62  ;;  %v89_v9 = vadd.f32 %v306_v7, %v66_v63 }
  0x12   :  { %v100_v10 = vmax.f32 %v84_v0, 0.0  ;;  %v101_v11 = vmax.f32 %v85_v2, 0.0  ;;  %v90_v12 = vadd.f32 %v306_v7, %v67_v3  ;;  %v91_v13 = vadd.f32 %v306_v7, %v68_v4 }
  0x13   :  { %v102_v14 = vmax.f32 %v86_v5, 0.0  ;;  %v103_v15 = vmax.f32 %v87_v6, 0.0  ;;  %v104_v16 = vmax.f32 %v88_v8, 0.0  ;;  %v105_v17 = vmax.f32 %v89_v9, 0.0 }
  0x14   :  { %v219_v18 = vpack.c.bf16 %v100_v10, %v100_v10  ;;  %v220_v1 = vpack.c.bf16 %v101_v11, %v101_v11  ;;  %v106_v19 = vmax.f32 %v90_v12, 0.0  ;;  %v107_v20 = vmax.f32 %v91_v13, 0.0 }
  0x15   :  { %v221_v21 = vpack.c.bf16 %v102_v14, %v102_v14  ;;  %v222_v22 = vpack.c.bf16 %v103_v15, %v103_v15  ;;  %v223_v23 = vpack.c.bf16 %v104_v16, %v104_v16  ;;  %v224_v24 = vpack.c.bf16 %v105_v17, %v105_v17 }
  0x16   :  { %181 = vst.msk [vmem:[%s419_s3 + $0x20] sm:$0xf] %vm172_vm0, %v219_v18  ;;  %182 = vst.msk [vmem:[%s419_s3 + $0x24] sm:$0xf] %vm172_vm0, %v220_v1  ;;  %v225_v7 = vpack.c.bf16 %v106_v19, %v106_v19  ;;  %v226_v25 = vpack.c.bf16 %v107_v20, %v107_v20 }
  0x17   :  { %183 = vst.msk [vmem:[%s419_s3 + $0x28] sm:$0xf] %vm172_vm0, %v221_v21  ;;  %184 = vst.msk [vmem:[%s419_s3 + $0x2c] sm:$0xf] %vm172_vm0, %v222_v22 }
  0x18   :  { %185 = vst.msk [vmem:[%s419_s3 + $0x30] sm:$0xf] %vm172_vm0, %v223_v23  ;;  %186 = vst.msk [vmem:[%s419_s3 + $0x34] sm:$0xf] %vm172_vm0, %v224_v24 }
  0x19   :  { %187 = vst.msk [vmem:[%s419_s3 + $0x38] sm:$0xf] %vm172_vm0, %v225_v7  ;;  %188 = vst.msk [vmem:[%s419_s3 + $0x3c] sm:$0xf] %vm172_vm0, %v226_v25 }

// kernel: patch_embed_forward.4
= control target key start
LH: loop header
LB: loop body
LE: loop exit
PB: predicated region body
PF: predicated region fallthrough
CT: control target
= control target key end

     0   :  { %vm116_vm0 = vcmask 1041408   ;;  %vm91_vm1 = vcmask 293888   ;;  %v672_v12 = vmov 0.0   ;;  %vm673_vm2 = vmmov 0   ;;  %s901_s1 = inlined_call_operand.vmem [shape: bf16[36,32], index: 1, kind: input, shape index: {}]   ;;  %s902_s0 = inlined_call_operand.vmem [shape: bf16[128,36], index: 0, kind: input, shape index: {}]   ;;  %s903_s2 = inlined_call_operand.vmem [shape: bf16[128,32], index: 2, kind: output, shape index: {0}]   ;;  %s904_s3 = inlined_call_operand.vmem [shape: f32[1,1,32], index: 3, kind: output, shape index: {1}]   ;;  %s905_s4 = inlined_call_operand.vmem [shape: f32[1,1,32], index: 4, kind: output, shape index: {2}]  }
   0x1   :  { %v661_v0 = vld [vmem:[%s901_s1 + $0x10] ss:$0 sps:$4 sm:$0x33]   ;;  %v662_v1 = vld [vmem:[%s901_s1 + $0x8] sm:$0xff]   ;;  %v664_v3 = vld [vmem:[%s902_s0] sm:$0xff]   ;;  %587 = vmatprep.subr.mxu1 %v672_v12  ;;  %619 = vmatprep.mubr.msk.f32.mxu1 %vm673_vm2, %v672_v12  ;;  %vm440_vm3 = vcmask 257024  }
   0x2   :  { %657 = vmatprep.subr.msk.bf16.mxu0 %vm116_vm0, %v661_v0  ;;  %v118_v2 = vsel %vm116_vm0, %v661_v0, 0  ;;  %v663_v4 = vld [vmem:[%s901_s1] sm:$0xff]   ;;  %571 = vmatprep.mubr.msk.bf16.mxu0 %vm91_vm1, %v664_v3  ;;  %v665_v5 = vld [vmem:[%s902_s0 + $0x8] sm:$0xff]   ;;  %v666_v6 = vld [vmem:[%s902_s0 + $0x10] sm:$0xff]   ;;  %v674_v61 = vmov 1.0   ;;  %vm373_vm4 = vcmask 253952  }
   0x3   :  { %566 = vmatpush3.bf16.msra.mxu0 %v118_v2  ;;  %v667_v7 = vld [vmem:[%s902_s0 + $0x18] sm:$0xff]   ;;  %v668_v8 = vld [vmem:[%s902_s0 + $0x20] sm:$0xff]   ;;  %v669_v9 = vld [vmem:[%s902_s0 + $0x28] sm:$0xff]  }
   0x4   :  { %567 = vmatprep.subr.bf16.mxu0 %v662_v1  ;;  %v670_v10 = vld [vmem:[%s902_s0 + $0x30] sm:$0xff]   ;;  %v671_v11 = vld [vmem:[%s902_s0 + $0x38] sm:$0xff]  }
   0x7   :  { %568 = vmatpush3.bf16.msra.mxu0 %v662_v1 }
   0x8   :  { %569 = vmatprep.subr.bf16.mxu0 %v663_v4 }
   0xb   :  { %570 = vmatpush3.bf16.msra.mxu0 %v663_v4 }
   0xc   :  { %622 = vmatprep.subr.mxu0 %v672_v12 }
   0xe   :  { %572 = vmatmul.mubr.msk.bf16.vlgmr.msra.gmra.mxu0 %vm91_vm1, %v665_v5 }
   0xf   :  { %575 = vmatprep.mubr.msk.bf16.mxu0 %vm91_vm1, %v666_v6 }
  0x16   :  { %576 = vmatmul.mubr.msk.bf16.gmra.mxu0 %vm91_vm1, %v667_v7 }
  0x17   :  { %579 = vmatprep.mubr.msk.bf16.mxu0 %vm91_vm1, %v668_v8 }
  0x1e   :  { %580 = vmatmul.mubr.msk.bf16.gmra.mxu0 %vm91_vm1, %v669_v9 }
  0x1f   :  { %583 = vmatprep.mubr.msk.bf16.mxu0 %vm91_vm1, %v670_v10 }
  0x26   :  { %584 = vmatmul.mubr.msk.bf16.gmra.mxu0 %vm91_vm1, %v671_v11 }
  0x27   :  { %654 = vmatprep.mubr.msk.f32.mxu0 %vm673_vm2, %v672_v12 }
  0xce   :  { %v745_v13 = vpop.f32.mrf.mxu0 }
  0xcf   :  { %v506_v14 = vpack.c.bf16 %v745_v13, %v745_v13  ;;  %v289_v58 = vmul.f32 %v745_v13, %v745_v13 }
  0xd0   :  { %v749_v15 = vpop.f32.mrf.mxu0 }
  0xd1   :  { %443 = vst.msk [vmem:[%s903_s2 + $0x8] sm:$0xf] %vm440_vm3, %v506_v14  ;;  %v504_v16 = vpack.c.bf16 %v749_v15, %v749_v15  ;;  %v287_v60 = vmul.f32 %v749_v15, %v749_v15 }
  0xd2   :  { %v757_v17 = vpop.f32.mrf.mxu0 }
  0xd3   :  { %441 = vst.msk [vmem:[%s903_s2] sm:$0xf] %vm440_vm3, %v504_v16  ;;  %v507_v18 = vpack.c.bf16 %v757_v17, %v757_v17  ;;  %v290_v57 = vmul.f32 %v757_v17, %v757_v17 }
  0xd4   :  { %v765_v19 = vpop.f32.mrf.mxu0 }
  0xd5   :  { %444 = vst.msk [vmem:[%s903_s2 + $0xc] sm:$0xf] %vm440_vm3, %v507_v18  ;;  %v505_v20 = vpack.c.bf16 %v765_v19, %v765_v19  ;;  %v288_v59 = vmul.f32 %v765_v19, %v765_v19 }
  0xd6   :  { %v773_v21 = vpop.f32.mrf.mxu0 }
  0xd7   :  { %442 = vst.msk [vmem:[%s903_s2 + $0x4] sm:$0xf] %vm440_vm3, %v505_v20  ;;  %v510_v22 = vpack.c.bf16 %v773_v21, %v773_v21  ;;  %v293_v54 = vmul.f32 %v773_v21, %v773_v21 }
  0xd8   :  { %v781_v23 = vpop.f32.mrf.mxu0 }
  0xd9   :  { %447 = vst.msk [vmem:[%s903_s2 + $0x18] sm:$0xf] %vm440_vm3, %v510_v22  ;;  %v508_v24 = vpack.c.bf16 %v781_v23, %v781_v23  ;;  %v291_v56 = vmul.f32 %v781_v23, %v781_v23 }
  0xda   :  { %v789_v25 = vpop.f32.mrf.mxu0 }
  0xdb   :  { %445 = vst.msk [vmem:[%s903_s2 + $0x10] sm:$0xf] %vm440_vm3, %v508_v24  ;;  %v511_v26 = vpack.c.bf16 %v789_v25, %v789_v25  ;;  %v294_v53 = vmul.f32 %v789_v25, %v789_v25 }
  0xdc   :  { %v797_v27 = vpop.f32.mrf.mxu0 }
  0xdd   :  { %448 = vst.msk [vmem:[%s903_s2 + $0x1c] sm:$0xf] %vm440_vm3, %v511_v26  ;;  %v509_v28 = vpack.c.bf16 %v797_v27, %v797_v27  ;;  %v292_v55 = vmul.f32 %v797_v27, %v797_v27 }
  0xde   :  { %v581_v29 = vpop.f32.mrf.mxu0 }
  0xdf   :  { %446 = vst.msk [vmem:[%s903_s2 + $0x14] sm:$0xf] %vm440_vm3, %v509_v28  ;;  %v514_v30 = vpack.c.bf16 %v581_v29, %v581_v29  ;;  %v297_v50 = vmul.f32 %v581_v29, %v581_v29 }
  0xe0   :  { %v186_v31 = vpop.f32.mrf.mxu0 }
  0xe1   :  { %451 = vst.msk [vmem:[%s903_s2 + $0x28] sm:$0xf] %vm440_vm3, %v514_v30  ;;  %v512_v32 = vpack.c.bf16 %v186_v31, %v186_v31  ;;  %v295_v52 = vmul.f32 %v186_v31, %v186_v31 }
  0xe2   :  { %v582_v33 = vpop.f32.mrf.mxu0 }
  0xe3   :  { %449 = vst.msk [vmem:[%s903_s2 + $0x20] sm:$0xf] %vm440_vm3, %v512_v32  ;;  %v515_v34 = vpack.c.bf16 %v582_v33, %v582_v33  ;;  %v298_v49 = vmul.f32 %v582_v33, %v582_v33 }
  0xe4   :  { %v189_v35 = vpop.f32.mrf.mxu0 }
  0xe5   :  { %452 = vst.msk [vmem:[%s903_s2 + $0x2c] sm:$0xf] %vm440_vm3, %v515_v34  ;;  %v513_v36 = vpack.c.bf16 %v189_v35, %v189_v35  ;;  %v296_v51 = vmul.f32 %v189_v35, %v189_v35 }
  0xe6   :  { %v585_v37 = vpop.f32.mrf.mxu0 }
  0xe7   :  { %450 = vst.msk [vmem:[%s903_s2 + $0x24] sm:$0xf] %vm440_vm3, %v513_v36  ;;  %v518_v38 = vpack.c.bf16 %v585_v37, %v585_v37  ;;  %v301_v45 = vmul.f32 %v585_v37, %v585_v37 }
  0xe8   :  { %v202_v39 = vpop.f32.mrf.mxu0 }
  0xe9   :  { %455 = vst.msk [vmem:[%s903_s2 + $0x38] sm:$0xf] %vm440_vm3, %v518_v38  ;;  %v516_v40 = vpack.c.bf16 %v202_v39, %v202_v39  ;;  %v299_v48 = vmul.f32 %v202_v39, %v202_v39 }
  0xea   :  { %v586_v41 = vpop.f32.mrf.mxu0 }
  0xeb   :  { %453 = vst.msk [vmem:[%s903_s2 + $0x30] sm:$0xf] %vm440_vm3, %v516_v40  ;;  %v302_v42 = vmul.f32 %v586_v41, %v586_v41  ;;  %v519_v43 = vpack.c.bf16 %v586_v41, %v586_v41  ;;  %588 = vmatpush3.msra.mxu1 %v586_v41 }
  0xec   :  { %v205_v44 = vpop.f32.mrf.mxu0  ;;  %589 = vmatprep.subr.mxu1 %v672_v12 }
  0xed   :  { %456 = vst.msk [vmem:[%s903_s2 + $0x3c] sm:$0xf] %vm440_vm3, %v519_v43  ;;  %v517_v46 = vpack.c.bf16 %v205_v44, %v205_v44  ;;  %590 = vmatpush3.msra.mxu1 %v585_v37  ;;  %623 = vmatpush3.msra.mxu0 %v302_v42  ;;  %v300_v47 = vmul.f32 %v205_v44, %v205_v44 }
  0xee   :  { %591 = vmatprep.subr.mxu1 %v672_v12  ;;  %624 = vmatprep.subr.mxu0 %v672_v12 }
  0xef   :  { %454 = vst.msk [vmem:[%s903_s2 + $0x34] sm:$0xf] %vm440_vm3, %v517_v46  ;;  %592 = vmatpush3.msra.mxu1 %v205_v44  ;;  %625 = vmatpush3.msra.mxu0 %v301_v45 }
  0xf0   :  { %593 = vmatprep.subr.mxu1 %v672_v12  ;;  %626 = vmatprep.subr.mxu0 %v672_v12 }
  0xf1   :  { %594 = vmatpush3.msra.mxu1 %v202_v39  ;;  %627 = vmatpush3.msra.mxu0 %v300_v47 }
  0xf2   :  { %595 = vmatprep.subr.mxu1 %v672_v12  ;;  %628 = vmatprep.subr.mxu0 %v672_v12 }
  0xf3   :  { %596 = vmatpush3.msra.mxu1 %v582_v33  ;;  %629 = vmatpush3.msra.mxu0 %v299_v48 }
  0xf4   :  { %597 = vmatprep.subr.mxu1 %v672_v12  ;;  %630 = vmatprep.subr.mxu0 %v672_v12 }
  0xf5   :  { %598 = vmatpush3.msra.mxu1 %v581_v29  ;;  %631 = vmatpush3.msra.mxu0 %v298_v49 }
  0xf6   :  { %599 = vmatprep.subr.mxu1 %v672_v12  ;;  %632 = vmatprep.subr.mxu0 %v672_v12 }
  0xf7   :  { %600 = vmatpush3.msra.mxu1 %v189_v35  ;;  %633 = vmatpush3.msra.mxu0 %v297_v50 }
  0xf8   :  { %601 = vmatprep.subr.mxu1 %v672_v12  ;;  %634 = vmatprep.subr.mxu0 %v672_v12 }
  0xf9   :  { %602 = vmatpush3.msra.mxu1 %v186_v31  ;;  %635 = vmatpush3.msra.mxu0 %v296_v51 }
  0xfa   :  { %603 = vmatprep.subr.mxu1 %v672_v12  ;;  %636 = vmatprep.subr.mxu0 %v672_v12 }
  0xfb   :  { %604 = vmatpush3.msra.mxu1 %v789_v25  ;;  %637 = vmatpush3.msra.mxu0 %v295_v52 }
  0xfc   :  { %605 = vmatprep.subr.mxu1 %v672_v12  ;;  %638 = vmatprep.subr.mxu0 %v672_v12 }
  0xfd   :  { %606 = vmatpush3.msra.mxu1 %v773_v21  ;;  %639 = vmatpush3.msra.mxu0 %v294_v53 }
  0xfe   :  { %607 = vmatprep.subr.mxu1 %v672_v12  ;;  %640 = vmatprep.subr.mxu0 %v672_v12 }
  0xff   :  { %608 = vmatpush3.msra.mxu1 %v797_v27  ;;  %641 = vmatpush3.msra.mxu0 %v293_v54 }
 0x100   :  { %609 = vmatprep.subr.mxu1 %v672_v12  ;;  %642 = vmatprep.subr.mxu0 %v672_v12 }
 0x101   :  { %610 = vmatpush3.msra.mxu1 %v781_v23  ;;  %643 = vmatpush3.msra.mxu0 %v292_v55 }
 0x102   :  { %611 = vmatprep.subr.mxu1 %v672_v12  ;;  %644 = vmatprep.subr.mxu0 %v672_v12 }
 0x103   :  { %612 = vmatpush3.msra.mxu1 %v757_v17  ;;  %645 = vmatpush3.msra.mxu0 %v291_v56 }
 0x104   :  { %613 = vmatprep.subr.mxu1 %v672_v12  ;;  %646 = vmatprep.subr.mxu0 %v672_v12 }
 0x105   :  { %614 = vmatpush3.msra.mxu1 %v745_v13  ;;  %647 = vmatpush3.msra.mxu0 %v290_v57 }
 0x106   :  { %615 = vmatprep.subr.mxu1 %v672_v12  ;;  %648 = vmatprep.subr.mxu0 %v672_v12 }
 0x107   :  { %616 = vmatpush3.msra.mxu1 %v765_v19  ;;  %649 = vmatpush3.msra.mxu0 %v289_v58 }
 0x108   :  { %617 = vmatprep.subr.mxu1 %v672_v12  ;;  %650 = vmatprep.subr.mxu0 %v672_v12 }
 0x109   :  { %618 = vmatpush3.msra.mxu1 %v749_v15  ;;  %651 = vmatpush3.msra.mxu0 %v288_v59 }
 0x10a   :  { %652 = vmatprep.subr.mxu0 %v672_v12  ;;  %620 = vmatmul.mubr.f32.vlgmr.msra.gmra.mxu1 %v674_v61 }
 0x10b   :  { %653 = vmatpush3.msra.mxu0 %v287_v60 }
 0x10c   :  { %655 = vmatmul.mubr.f32.vlgmr.msra.gmra.mxu0 %v674_v61 }
 0x1ca   :  { %v283_v62 = vpop.f32.mrf.mxu1 }
 0x1cb   :  { %374 = vst.msk [vmem:[%s904_s3] sm:$0x1] %vm373_vm4, %v283_v62 }
 0x1cc   :  { %v369_v63 = vpop.f32.mrf.mxu0  ;;  %v621_v0 = vpop.f32.mrf.mxu1 }
 0x1cd   :  { %375 = vst.msk [vmem:[%s905_s4] sm:$0x1] %vm373_vm4, %v369_v63 }
 0x1ce   :  { %v656_v1 = vpop.f32.mrf.mxu0 }

// kernel: patch_embed_forward.7
= control target key start
LH: loop header
LB: loop body
LE: loop exit
PB: predicated region body
PF: predicated region fallthrough
CT: control target
= control target key end

     0   :  { %s144_s0 = inlined_call_operand.vmem [shape: bf16[32,64], index: 0, kind: input, shape index: {}]   ;;  %s145_s1 = inlined_call_operand.vmem [shape: f32[1,64], index: 1, kind: input, shape index: {}]   ;;  %s146_s2 = inlined_call_operand.vmem [shape: f32[1,64], index: 2, kind: input, shape index: {}]   ;;  %s147_s3 = inlined_call_operand.hbm [shape: f32[32,64], index: 3, kind: output, shape index: {}]  }
   0x1   :  { %v73_v0 = vld [vmem:[%s144_s0] sm:$0xff]   ;;  %v80_v4 = vld [vmem:[%s144_s0 + $0x8] sm:$0xff]  }
   0x2   :  { %v70_v1 = vld [vmem:[%s145_s1] ss:$0 sm:$0xff]  ;;  %v74_v2 = vunpack.c.l.bf16 %v73_v0  ;;  %v75_v3 = vunpack.c.h.bf16 %v73_v0 }
   0x3   :  { %8 = vsyncpa [#allocation3], 0  ;;  %v71_v5 = vld [vmem:[%s146_s2] ss:$0 sm:$0xff]  ;;  %v78_v6 = vunpack.c.l.bf16 %v80_v4  ;;  %v79_v7 = vunpack.c.h.bf16 %v80_v4  ;;  %s106_s1 = smov [#allocation2]   ;;  %vm49_vm0 = vcmask 523264  }
   0x4   :  { %v30_v8 = vmul.f32 %v74_v2, %v70_v1  ;;  %v31_v9 = vmul.f32 %v75_v3, %v70_v1  ;;  %s59_s20 = sshll.u32 %s106_s1, 4  ;;  %s60_s20 = int_to_ptr.vmem [resolvable:$true] %s59_s20 }
   0x5   :  { %v32_v10 = vmul.f32 %v78_v6, %v70_v1  ;;  %v33_v11 = vmul.f32 %v79_v7, %v70_v1  ;;  %s84_s0 = scalar_lea.vmem %s60_s20, 512  ;;  %p89_p1 = scmp.lt.s32.totalorder %s60_s20, %s60_s20 }
   0x6   :  { %v41_v12 = vadd.f32 %v71_v5, %v30_v8  ;;  %v42_v13 = vadd.f32 %v71_v5, %v31_v9  ;;  %p85_p0 = scmp.ne.s32.totalorder %s60_s20, %s84_s0  ;;  %p90_p2 = scmp.lt.s32.totalorder %s84_s0, %s84_s0 }
   0x7   :  { %v43_v14 = vadd.f32 %v71_v5, %v32_v10  ;;  %v44_v15 = vadd.f32 %v71_v5, %v33_v11 }
   0x8   :  { %v45_v16 = vmax.f32 %v41_v12, 0.0  ;;  %v46_v17 = vmax.f32 %v42_v13, 0.0  ;;  %p91_p3 = por %p90_p2, %p89_p1 }
   0x9   :  { %v47_v18 = vmax.f32 %v43_v14, 0.0  ;;  %v48_v19 = vmax.f32 %v44_v15, 0.0 }
   0xa   :  { %50 = vst.msk [vmem:[#allocation2] sm:$0xff] %vm49_vm0, %v45_v16  ;;  %51 = vst.msk [vmem:[#allocation2 + $0x8] sm:$0xff] %vm49_vm0, %v46_v17  ;;  %p92_p4 = pnand %p91_p3, %p85_p0 }
   0xb   :  { %52 = vst.msk [vmem:[#allocation2 + $0x10] sm:$0xff] %vm49_vm0, %v47_v18  ;;  %53 = vst.msk [vmem:[#allocation2 + $0x18] sm:$0xff] %vm49_vm0, %v48_v19 }
   0xc   :  { %95 = shalt.err (!%p92_p4)
}
   0xd   :  { %s107_s2 = smov 128   ;;  %s108_s21 = smov 8  }
   0xe   :  { %65 = dma.vmem_to_hbm [thread:$0]  %s60_s20, 512, %s147_s3, [#allocation3], %s107_s2, %s107_s2, %s108_s21  }
   0xf   :  { %104 = dma.done.wait [#allocation3], 512  }
  0x10   :  { %105 = vsyncadd [#allocation3], 4294966784 }
  0x11   :  { %69 = vsyncpa [#allocation3], 1 }

// kernel: patch_embed_forward.6
= control target key start
LH: loop header
LB: loop body
LE: loop exit
PB: predicated region body
PF: predicated region fallthrough
CT: control target
= control target key end

     0   :  { %vm197_vm0 = vcmask 261120   ;;  %v622_v24 = vmov 0.0   ;;  %vm623_vm1 = vmmov 0   ;;  %vm468_vm2 = vcmask 519168   ;;  %s750_s1 = inlined_call_operand.vmem [shape: bf16[288,64], index: 1, kind: input, shape index: {}]   ;;  %s751_s0 = inlined_call_operand.vmem [shape: bf16[32,288], index: 0, kind: input, shape index: {}]   ;;  %s752_s2 = inlined_call_operand.vmem [shape: bf16[32,64], index: 2, kind: output, shape index: {0}]   ;;  %s753_s3 = inlined_call_operand.vmem [shape: f32[1,1,64], index: 3, kind: output, shape index: {1}]   ;;  %s754_s4 = inlined_call_operand.vmem [shape: f32[1,1,64], index: 4, kind: output, shape index: {2}]  }
   0x1   :  { %v596_v0 = vld [vmem:[%s750_s1 + $0x78] sm:$0xff]   ;;  %v598_v2 = vld [vmem:[%s750_s1 + $0x70] sm:$0xff]   ;;  %v600_v4 = vld [vmem:[%s750_s1 + $0x68] sm:$0xff]   ;;  %v624_v50 = vmov 1.0   ;;  %vm449_vm3 = vcmask 516096  }
   0x2   :  { %v597_v1 = vld [vmem:[%s750_s1 + $0x38] sm:$0xff]   ;;  %521 = vmatprep.subr.bf16.mxu0 %v596_v0  ;;  %v599_v3 = vld [vmem:[%s750_s1 + $0x30] sm:$0xff]   ;;  %v601_v5 = vld [vmem:[%s750_s1 + $0x28] sm:$0xff]  }
   0x3   :  { %522 = vmatpush3.bf16.msra.mxu0 %v597_v1  ;;  %v602_v6 = vld [vmem:[%s750_s1 + $0x60] sm:$0xff]   ;;  %v604_v8 = vld [vmem:[%s750_s1 + $0x58] sm:$0xff]   ;;  %v610_v9 = vld [vmem:[%s750_s1 + $0x88] sm:$0xff]  }
   0x4   :  { %523 = vmatprep.subr.bf16.mxu0 %v598_v2  ;;  %v603_v7 = vld [vmem:[%s750_s1 + $0x20] sm:$0xff]   ;;  %v605_v10 = vld [vmem:[%s750_s1 + $0x18] sm:$0xff]   ;;  %v606_v11 = vld [vmem:[%s750_s1 + $0x50] sm:$0xff]   ;;  %563 = vmatprep.subr.bf16.mxu1 %v610_v9 }
   0x5   :  { %v607_v12 = vld [vmem:[%s750_s1 + $0x10] sm:$0xff]   ;;  %564 = vmatpush3.bf16.msra.mxu1 %v610_v9  ;;  %v613_v13 = vld [vmem:[%s750_s1 + $0x80] sm:$0xff]   ;;  %v608_v14 = vld [vmem:[%s750_s1 + $0x48] sm:$0xff]  }
   0x6   :  { %565 = vmatprep.subr.bf16.mxu1 %v613_v13  ;;  %v616_v15 = vld [vmem:[%s751_s0 + $0x4] ss:$12 sps:$4 sm:$0xff]   ;;  %v617_v16 = vld [vmem:[%s751_s0 + $0x8] ss:$12 sps:$4 sm:$0xff]   ;;  %v618_v17 = vld [vmem:[%s751_s0 + $0x20] ss:$12 sps:$4 sm:$0xff]  }
   0x7   :  { %524 = vmatpush3.bf16.msra.mxu0 %v599_v3  ;;  %236 = vmatprep.mubr.bf16.mxu0 %v616_v15  ;;  %v609_v18 = vld [vmem:[%s750_s1 + $0x8] sm:$0xff]   ;;  %v611_v19 = vld [vmem:[%s750_s1 + $0x40] sm:$0xff]  }
   0x8   :  { %525 = vmatprep.subr.bf16.mxu0 %v600_v4  ;;  %567 = vmatprep.mubr.msk.bf16.mxu1 %vm197_vm0, %v617_v16  ;;  %v612_v20 = vld [vmem:[%s750_s1] sm:$0xff]   ;;  %v619_v22 = vld [vmem:[%s751_s0 + $0x1c] ss:$12 sps:$4 sm:$0xff]  }
   0x9   :  { %566 = vmatpush3.bf16.msra.mxu1 %v613_v13  ;;  %v614_v21 = vld [vmem:[%s751_s0] ss:$12 sps:$4 sm:$0xff]   ;;  %v621_v23 = vld [vmem:[%s751_s0 + $0x18] ss:$12 sps:$4 sm:$0xff]  }
   0xa   :  { %571 = vmatprep.subr.mxu1 %v622_v24 }
   0xb   :  { %526 = vmatpush3.bf16.msra.mxu0 %v601_v5 }
   0xc   :  { %527 = vmatprep.subr.bf16.mxu0 %v602_v6  ;;  %568 = vmatmul.mubr.msk.bf16.vlgmr.msra.gmra.mxu1 %vm197_vm0, %v618_v17 }
   0xd   :  { %579 = vmatprep.mubr.msk.f32.mxu1 %vm623_vm1, %v622_v24 }
   0xf   :  { %528 = vmatpush3.bf16.msra.mxu0 %v603_v7 }
  0x10   :  { %529 = vmatprep.subr.bf16.mxu0 %v604_v8 }
  0x13   :  { %530 = vmatpush3.bf16.msra.mxu0 %v605_v10 }
  0x14   :  { %531 = vmatprep.subr.bf16.mxu0 %v606_v11 }
  0x17   :  { %532 = vmatpush3.bf16.msra.mxu0 %v607_v12 }
  0x18   :  { %533 = vmatprep.subr.bf16.mxu0 %v608_v14 }
  0x1b   :  { %534 = vmatpush3.bf16.msra.mxu0 %v609_v18 }
  0x1c   :  { %535 = vmatprep.subr.bf16.mxu0 %v611_v19 }
  0x1f   :  { %536 = vmatpush3.bf16.msra.mxu0 %v612_v20 }
  0x22   :  { %237 = vmatmul.mubr.bf16.vlgmr.msra.gmra.mxu0 %v614_v21 }
  0x23   :  { %244 = vmatprep.mubr.bf16.mxu0 %v619_v22 }
  0x2a   :  { %245 = vmatmul.mubr.bf16.gmra.mxu0 %v621_v23 }
  0xcc   :  { %v569_v25 = vpop.f32.mrf.mxu1 }
  0xce   :  { %v287_v26 = vpop.f32.mrf.mxu1 }
  0xd0   :  { %v570_v29 = vpop.f32.mrf.mxu1 }
  0xd2   :  { %v290_v34 = vpop.f32.mrf.mxu1 }
  0xe2   :  { %v537_v27 = vpop.f32.mrf.mxu0 }
  0xe4   :  { %v538_v28 = vpop.f32.mrf.mxu0 }
  0xe5   :  { %v539_v30 = vadd.f32 %v538_v28, %v537_v27 }
  0xe6   :  { %v540_v31 = vpop.f32.mrf.mxu0 }
  0xe7   :  { %v288_v32 = vadd.f32 %v539_v30, %v287_v26 }
  0xe8   :  { %v541_v33 = vpop.f32.mrf.mxu0 }
  0xe9   :  { %v517_v35 = vpack.c.bf16 %v288_v32, %v288_v32  ;;  %v542_v36 = vadd.f32 %v541_v33, %v540_v31  ;;  %v375_v53 = vmul.f32 %v288_v32, %v288_v32 }
  0xea   :  { %v543_v37 = vpop.f32.mrf.mxu0 }
  0xeb   :  { %469 = vst.msk [vmem:[%s752_s2] sm:$0xf] %vm468_vm2, %v517_v35  ;;  %v291_v38 = vadd.f32 %v542_v36, %v290_v34 }
  0xec   :  { %v544_v39 = vpop.f32.mrf.mxu0 }
  0xed   :  { %v518_v40 = vpack.c.bf16 %v291_v38, %v291_v38  ;;  %v545_v41 = vadd.f32 %v544_v39, %v543_v37  ;;  %v376_v52 = vmul.f32 %v291_v38, %v291_v38 }
  0xee   :  { %v546_v42 = vpop.f32.mrf.mxu0 }
  0xef   :  { %470 = vst.msk [vmem:[%s752_s2 + $0x4] sm:$0xf] %vm468_vm2, %v518_v40  ;;  %v296_v43 = vadd.f32 %v569_v25, %v545_v41 }
  0xf0   :  { %v547_v44 = vpop.f32.mrf.mxu0 }
  0xf1   :  { %v519_v45 = vpack.c.bf16 %v296_v43, %v296_v43  ;;  %v548_v46 = vadd.f32 %v547_v44, %v546_v42  ;;  %v377_v51 = vmul.f32 %v296_v43, %v296_v43 }
  0xf3   :  { %471 = vst.msk [vmem:[%s752_s2 + $0x8] sm:$0xf] %vm468_vm2, %v519_v45  ;;  %v299_v47 = vadd.f32 %v570_v29, %v548_v46 }
  0xf5   :  { %v520_v48 = vpack.c.bf16 %v299_v47, %v299_v47  ;;  %572 = vmatpush3.msra.mxu1 %v299_v47  ;;  %v378_v49 = vmul.f32 %v299_v47, %v299_v47 }
  0xf6   :  { %573 = vmatprep.subr.mxu1 %v622_v24 }
  0xf7   :  { %472 = vst.msk [vmem:[%s752_s2 + $0xc] sm:$0xf] %vm468_vm2, %v520_v48  ;;  %574 = vmatpush3.msra.mxu1 %v296_v43 }
  0xf8   :  { %575 = vmatprep.subr.mxu1 %v622_v24 }
  0xf9   :  { %576 = vmatpush3.msra.mxu1 %v291_v38 }
  0xfa   :  { %577 = vmatprep.subr.mxu1 %v622_v24 }
  0xfb   :  { %578 = vmatpush3.msra.mxu1 %v288_v32 }
  0xfc   :  { %580 = vmatmul.mubr.msk.f32.vlgmr.msra.gmra.mxu1 %vm197_vm0, %v624_v50  ;;  %582 = vmatprep.subr.mxu1 %v622_v24 }
  0xfd   :  { %583 = vmatpush3.msra.mxu1 %v378_v49  ;;  %590 = vmatprep.mubr.msk.f32.mxu1 %vm623_vm1, %v622_v24 }
  0xfe   :  { %584 = vmatprep.subr.mxu1 %v622_v24 }
  0xff   :  { %585 = vmatpush3.msra.mxu1 %v377_v51 }
 0x100   :  { %586 = vmatprep.subr.mxu1 %v622_v24 }
 0x101   :  { %587 = vmatpush3.msra.mxu1 %v376_v52 }
 0x102   :  { %588 = vmatprep.subr.mxu1 %v622_v24 }
 0x103   :  { %589 = vmatpush3.msra.mxu1 %v375_v53 }
 0x104   :  { %591 = vmatmul.mubr.msk.f32.vlgmr.msra.gmra.mxu1 %vm197_vm0, %v624_v50 }
 0x1bc   :  { %v371_v54 = vpop.f32.mrf.mxu1 }
 0x1bd   :  { %450 = vst.msk [vmem:[%s753_s3] sm:$0x1] %vm449_vm3, %v371_v54 }
 0x1be   :  { %v581_v55 = vpop.f32.mrf.mxu1 }
 0x1c4   :  { %v445_v56 = vpop.f32.mrf.mxu1 }
 0x1c5   :  { %451 = vst.msk [vmem:[%s754_s4] sm:$0x1] %vm449_vm3, %v445_v56 }
 0x1c6   :  { %v592_v57 = vpop.f32.mrf.mxu1 }

</bundles_post_ra>
